<compile_context>
chip_gen: v6e
topology: v6e:2x2x1
jax: 0.10.0
libtpu: 0.0.40
codegen_flags: <defaults>
</compile_context>

<pallas_src>
import jax
import jax.numpy as jnp
from jax import lax
from jax.experimental import pallas as pl
from jax.experimental.pallas import tpu as pltpu


def _pick_tile(dim, target, align):
    """Largest tile that divides `dim`, is <= target, and is a multiple of `align`
    (or the full extent as a legal fallback)."""
    if dim <= target:
        return dim
    t = (target // align) * align
    while t >= align:
        if dim % t == 0:
            return t
        t -= align
    return dim  # fallback: full extent (always legal for BlockSpec)


def _make_distill_kernel(T: float, alpha: float):
    T = float(T)
    alpha = float(alpha)
    t_is_one = (T == 1.0)
    inv_T = 1.0 / T

    def kernel(student_ref, teacher_ref, labels_ref, out_ref,
               m_t, l_t, m_s, l_s, kl_num, picked, *extra):
        k = pl.program_id(1)
        nc = pl.num_programs(1)

        @pl.when(k == 0)
        def _init():
            m_t[...] = jnp.full_like(m_t, -jnp.inf)
            l_t[...] = jnp.zeros_like(l_t)
            m_s[...] = jnp.full_like(m_s, -jnp.inf)
            l_s[...] = jnp.zeros_like(l_s)
            kl_num[...] = jnp.zeros_like(kl_num)
            picked[...] = jnp.zeros_like(picked)
            if not t_is_one:
                m_s2, l_s2 = extra
                m_s2[...] = jnp.full_like(m_s2, -jnp.inf)
                l_s2[...] = jnp.zeros_like(l_s2)

        s = student_ref[...].astype(jnp.float32)   # (TB, TC)
        t = teacher_ref[...].astype(jnp.float32)   # (TB, TC)
        lab = labels_ref[...]                      # (TB, 1) int32
        TB, TC = s.shape

        ts = t if t_is_one else t * inv_T
        ss = s if t_is_one else s * inv_T

        # --- teacher: online logsumexp(t/T) + KL numerator sum_j e_t * (t_j - s_j) ---
        m_t_old = m_t[...]
        m_t_new = jnp.maximum(m_t_old, jnp.max(ts, axis=1, keepdims=True))
        r_t = jnp.exp(m_t_old - m_t_new)                       # rescale (0 on first block)
        e_t = jnp.exp(ts - m_t_new)
        l_t[...] = r_t * l_t[...] + jnp.sum(e_t, axis=1, keepdims=True)
        kl_num[...] = r_t * kl_num[...] + jnp.sum(e_t * (t - s), axis=1, keepdims=True)
        m_t[...] = m_t_new

        # --- student: online logsumexp(s/T) ---
        m_s_old = m_s[...]
        m_s_new = jnp.maximum(m_s_old, jnp.max(ss, axis=1, keepdims=True))
        l_s[...] = (jnp.exp(m_s_old - m_s_new) * l_s[...]
                    + jnp.sum(jnp.exp(ss - m_s_new), axis=1, keepdims=True))
        m_s[...] = m_s_new

        if not t_is_one:
            # General T: cross-entropy needs logsumexp of the *unscaled* student logits.
            m_s2, l_s2 = extra
            m2_old = m_s2[...]
            m2_new = jnp.maximum(m2_old, jnp.max(s, axis=1, keepdims=True))
            l_s2[...] = (jnp.exp(m2_old - m2_new) * l_s2[...]
                         + jnp.sum(jnp.exp(s - m2_new), axis=1, keepdims=True))
            m_s2[...] = m2_new

        # --- CE numerator: s[row, label]; only the class block holding the label contributes ---
        col = lax.broadcasted_iota(jnp.int32, (TB, TC), 1) + k * TC
        picked[...] = picked[...] + jnp.sum(jnp.where(col == lab, s, 0.0),
                                            axis=1, keepdims=True)

        @pl.when(k == nc - 1)
        def _finalize():
            log_z_t = m_t[...] + jnp.log(l_t[...])    # logsumexp(teacher / T)
            log_z_s = m_s[...] + jnp.log(l_s[...])    # logsumexp(student / T)
            # per-row KL(p || q) = (1/T) * sum_j e_t*(t_j - s_j) / Z_t - logZ_t + logZ_s
            kl_row = (kl_num[...] * inv_T) / l_t[...] - log_z_t + log_z_s
            if t_is_one:
                log_z_raw = log_z_s                   # T == 1: reuse student logsumexp for CE
            else:
                m_s2, l_s2 = extra
                log_z_raw = m_s2[...] + jnp.log(l_s2[...])
            ce_row = log_z_raw - picked[...]          # -log_softmax(student)[label]
            out_ref[...] = alpha * (T * T) * kl_row + (1.0 - alpha) * ce_row

    return kernel


def distillation_loss_pallas(student_logits, teacher_logits, labels, T=1.0, alpha=0.5,
                             *, batch_tile_target=256, class_tile_target=2048):
    """student_logits, teacher_logits: (B, C) float; labels: (B,) int. Returns scalar f32."""
    B, C = student_logits.shape
    labels2d = labels.astype(jnp.int32).reshape(B, 1)

    TB = _pick_tile(B, batch_tile_target, 8)
    TC = _pick_tile(C, class_tile_target, 128)
    nb, nc = B // TB, C // TC

    scratch = [pltpu.VMEM((TB, 1), jnp.float32) for _ in range(6)]
    if float(T) != 1.0:
        scratch += [pltpu.VMEM((TB, 1), jnp.float32) for _ in range(2)]

    kernel = _make_distill_kernel(T, alpha)

    per_row = pl.pallas_call(
        kernel,
        out_shape=jax.ShapeDtypeStruct((B, 1), jnp.float32),
        grid_spec=pltpu.PrefetchScalarGridSpec(
            num_scalar_prefetch=0,
            grid=(nb, nc),
            in_specs=[
                pl.BlockSpec((TB, TC), lambda i, k: (i, k)),   # student tile
                pl.BlockSpec((TB, TC), lambda i, k: (i, k)),   # teacher tile
                pl.BlockSpec((TB, 1), lambda i, k: (i, 0)),    # labels (resident across class axis)
            ],
            out_specs=pl.BlockSpec((TB, 1), lambda i, k: (i, 0)),
            scratch_shapes=scratch,
        ),
        compiler_params=pltpu.CompilerParams(
            dimension_semantics=("parallel", "arbitrary")),
    )(student_logits, teacher_logits, labels2d)

    # Final batch mean of per-row losses (tiny op; fused by XLA).
    return jnp.sum(per_row) / B


def distillation_loss_ref(student_logits, teacher_logits, labels, T=1.0, alpha=0.5):
    """Pure-JAX reference mirroring the PyTorch semantics (sanity check)."""
    s = student_logits.astype(jnp.float32)
    t = teacher_logits.astype(jnp.float32)
    B = s.shape[0]
    soft_targets = jax.nn.softmax(t / T, axis=1)
    soft_prob = jax.nn.log_softmax(s / T, axis=1)
    kl = jnp.sum(soft_targets * (jnp.log(soft_targets) - soft_prob)) / B
    distillation = kl * (T * T)
    log_probs = jax.nn.log_softmax(s, axis=1)
    ce = -jnp.mean(jnp.take_along_axis(log_probs, labels[:, None], axis=1))
    return alpha * distillation + (1.0 - alpha) * ce


if __name__ == "__main__":
    key = jax.random.PRNGKey(0)
    k1, k2, k3, k4, k5, k6 = jax.random.split(key, 6)

    # --- Module-default config (forward passes T=1.0, alpha=0.5), small shapes: B=8, C=32 ---
    B, C = 8, 32
    student = jax.random.normal(k1, (B, C), dtype=jnp.float32)
    teacher = jax.random.normal(k2, (B, C), dtype=jnp.float32)
    labels = jax.random.randint(k3, (B,), 0, C, dtype=jnp.int32)

    loss = distillation_loss_pallas(student, teacher, labels, T=1.0, alpha=0.5)
    loss = jax.block_until_ready(loss)
    ref = distillation_loss_ref(student, teacher, labels, T=1.0, alpha=0.5)
    assert jnp.allclose(loss, ref, rtol=1e-5, atol=1e-5), (loss, ref)

    # --- Exercise the tiled (multi-block) online-softmax path and the general-T branch ---
    B2, C2 = 16, 256
    student2 = jax.random.normal(k4, (B2, C2), dtype=jnp.float32)
    teacher2 = jax.random.normal(k5, (B2, C2), dtype=jnp.float32)
    labels2 = jax.random.randint(k6, (B2,), 0, C2, dtype=jnp.int32)

    loss2 = distillation_loss_pallas(student2, teacher2, labels2, T=2.0, alpha=0.5,
                                     batch_tile_target=8, class_tile_target=128)  # grid (2, 2)
    loss2 = jax.block_until_ready(loss2)
    ref2 = distillation_loss_ref(student2, teacher2, labels2, T=2.0, alpha=0.5)
    assert jnp.allclose(loss2, ref2, rtol=1e-5, atol=1e-5), (loss2, ref2)

    print("KERNEL_OK")
</pallas_src>

<mosaic_0001>
module attributes {stable_mosaic.version = 11 : i64} {
  func.func @kernel(%arg0: i32, %arg1: i32, %arg2: memref<8x32xf32, #tpu.memory_space<vmem>>, %arg3: memref<8x32xf32, #tpu.memory_space<vmem>>, %arg4: memref<8x1xi32, #tpu.memory_space<vmem>>, %arg5: memref<8x1xf32, #tpu.memory_space<vmem>>, %arg6: memref<8x1xf32, #tpu.memory_space<vmem>>, %arg7: memref<8x1xf32, #tpu.memory_space<vmem>>, %arg8: memref<8x1xf32, #tpu.memory_space<vmem>>, %arg9: memref<8x1xf32, #tpu.memory_space<vmem>>, %arg10: memref<8x1xf32, #tpu.memory_space<vmem>>, %arg11: memref<8x1xf32, #tpu.memory_space<vmem>>) attributes {dimension_semantics = [#tpu.dimension_semantics<parallel>, #tpu.dimension_semantics<arbitrary>], iteration_bounds = array<i64: 1, 1>, scalar_prefetch = 0 : i64, scratch_operands = 6 : i64, tpu.core_type = #tpu.core_type<tc>, window_params = [{transform_indices = @transform_0, window_bounds = array<i64: 8, 32>}, {transform_indices = @transform_1, window_bounds = array<i64: 8, 32>}, {transform_indices = @transform_2, window_bounds = array<i64: 8, 1>}, {transform_indices = @transform_3, window_bounds = array<i64: 8, 1>}]} {
    %c0_i32 = arith.constant 0 : i32
    %0 = arith.cmpi eq, %arg1, %c0_i32 : i32
    %1 = arith.extui %0 : i1 to i32
    %c0_i32_0 = arith.constant 0 : i32
    %2 = arith.cmpi ne, %1, %c0_i32_0 : i32
    scf.if %2 {
      %cst_38 = arith.constant 0xFF800000 : f32
      %62 = vector.broadcast %cst_38 : f32 to vector<8x1xf32>
      %c0_39 = arith.constant 0 : index
      %c0_40 = arith.constant 0 : index
      %63 = vector.load %arg6[%c0_39, %c0_40] : memref<8x1xf32, #tpu.memory_space<vmem>>, vector<8x1xf32>
      tpu.vector_store %arg6[%c0_39, %c0_40], %62 {strides = array<i32>} : memref<8x1xf32, #tpu.memory_space<vmem>>, vector<8x1xf32>,
      %cst_41 = arith.constant 0.000000e+00 : f32
      %64 = vector.broadcast %cst_41 : f32 to vector<8x1xf32>
      %c0_42 = arith.constant 0 : index
      %c0_43 = arith.constant 0 : index
      %65 = vector.load %arg7[%c0_42, %c0_43] : memref<8x1xf32, #tpu.memory_space<vmem>>, vector<8x1xf32>
      tpu.vector_store %arg7[%c0_42, %c0_43], %64 {strides = array<i32>} : memref<8x1xf32, #tpu.memory_space<vmem>>, vector<8x1xf32>,
      %cst_44 = arith.constant 0xFF800000 : f32
      %66 = vector.broadcast %cst_44 : f32 to vector<8x1xf32>
      %c0_45 = arith.constant 0 : index
      %c0_46 = arith.constant 0 : index
      %67 = vector.load %arg8[%c0_45, %c0_46] : memref<8x1xf32, #tpu.memory_space<vmem>>, vector<8x1xf32>
      tpu.vector_store %arg8[%c0_45, %c0_46], %66 {strides = array<i32>} : memref<8x1xf32, #tpu.memory_space<vmem>>, vector<8x1xf32>,
      %cst_47 = arith.constant 0.000000e+00 : f32
      %68 = vector.broadcast %cst_47 : f32 to vector<8x1xf32>
      %c0_48 = arith.constant 0 : index
      %c0_49 = arith.constant 0 : index
      %69 = vector.load %arg9[%c0_48, %c0_49] : memref<8x1xf32, #tpu.memory_space<vmem>>, vector<8x1xf32>
      tpu.vector_store %arg9[%c0_48, %c0_49], %68 {strides = array<i32>} : memref<8x1xf32, #tpu.memory_space<vmem>>, vector<8x1xf32>,
      %cst_50 = arith.constant 0.000000e+00 : f32
      %70 = vector.broadcast %cst_50 : f32 to vector<8x1xf32>
      %c0_51 = arith.constant 0 : index
      %c0_52 = arith.constant 0 : index
      %71 = vector.load %arg10[%c0_51, %c0_52] : memref<8x1xf32, #tpu.memory_space<vmem>>, vector<8x1xf32>
      tpu.vector_store %arg10[%c0_51, %c0_52], %70 {strides = array<i32>} : memref<8x1xf32, #tpu.memory_space<vmem>>, vector<8x1xf32>,
      %cst_53 = arith.constant 0.000000e+00 : f32
      %72 = vector.broadcast %cst_53 : f32 to vector<8x1xf32>
      %c0_54 = arith.constant 0 : index
      %c0_55 = arith.constant 0 : index
      %73 = vector.load %arg11[%c0_54, %c0_55] : memref<8x1xf32, #tpu.memory_space<vmem>>, vector<8x1xf32>
      tpu.vector_store %arg11[%c0_54, %c0_55], %72 {strides = array<i32>} : memref<8x1xf32, #tpu.memory_space<vmem>>, vector<8x1xf32>,
    } else {
    }
    %c0 = arith.constant 0 : index
    %c0_1 = arith.constant 0 : index
    %3 = vector.load %arg2[%c0, %c0_1] : memref<8x32xf32, #tpu.memory_space<vmem>>, vector<8x32xf32>
    %c0_2 = arith.constant 0 : index
    %c0_3 = arith.constant 0 : index
    %4 = vector.load %arg3[%c0_2, %c0_3] : memref<8x32xf32, #tpu.memory_space<vmem>>, vector<8x32xf32>
    %c0_4 = arith.constant 0 : index
    %c0_5 = arith.constant 0 : index
    %5 = vector.load %arg4[%c0_4, %c0_5] : memref<8x1xi32, #tpu.memory_space<vmem>>, vector<8x1xi32>
    %c0_6 = arith.constant 0 : index
    %c0_7 = arith.constant 0 : index
    %6 = vector.load %arg6[%c0_6, %c0_7] : memref<8x1xf32, #tpu.memory_space<vmem>>, vector<8x1xf32>
    %cst = arith.constant dense<0xFF800000> : vector<8xf32>
    %7 = vector.multi_reduction <maximumf>, %4, %cst [1] : vector<8x32xf32> to vector<8xf32>
    %8 = vector.shape_cast %7 : vector<8xf32> to vector<8x1xf32>
    %9 = arith.maximumf %6, %8 : vector<8x1xf32>
    %10 = arith.subf %6, %9 : vector<8x1xf32>
    %11 = math.exp %10 : vector<8x1xf32>
    %12 = vector.broadcast %9 : vector<8x1xf32> to vector<8x32xf32>
    %13 = arith.subf %4, %12 : vector<8x32xf32>
    %14 = math.exp %13 : vector<8x32xf32>
    %c0_8 = arith.constant 0 : index
    %c0_9 = arith.constant 0 : index
    %15 = vector.load %arg7[%c0_8, %c0_9] : memref<8x1xf32, #tpu.memory_space<vmem>>, vector<8x1xf32>
    %16 = arith.mulf %11, %15 : vector<8x1xf32>
    %cst_10 = arith.constant dense<0.000000e+00> : vector<8xf32>
    %17 = vector.multi_reduction <add>, %14, %cst_10 [1] : vector<8x32xf32> to vector<8xf32>
    %18 = vector.shape_cast %17 : vector<8xf32> to vector<8x1xf32>
    %19 = arith.addf %16, %18 : vector<8x1xf32>
    %c0_11 = arith.constant 0 : index
    %c0_12 = arith.constant 0 : index
    %20 = vector.load %arg7[%c0_11, %c0_12] : memref<8x1xf32, #tpu.memory_space<vmem>>, vector<8x1xf32>
    tpu.vector_store %arg7[%c0_11, %c0_12], %19 {strides = array<i32>} : memref<8x1xf32, #tpu.memory_space<vmem>>, vector<8x1xf32>,
    %c0_13 = arith.constant 0 : index
    %c0_14 = arith.constant 0 : index
    %21 = vector.load %arg10[%c0_13, %c0_14] : memref<8x1xf32, #tpu.memory_space<vmem>>, vector<8x1xf32>
    %22 = arith.mulf %11, %21 : vector<8x1xf32>
    %23 = arith.subf %4, %3 : vector<8x32xf32>
    %24 = arith.mulf %14, %23 : vector<8x32xf32>
    %cst_15 = arith.constant dense<0.000000e+00> : vector<8xf32>
    %25 = vector.multi_reduction <add>, %24, %cst_15 [1] : vector<8x32xf32> to vector<8xf32>
    %26 = vector.shape_cast %25 : vector<8xf32> to vector<8x1xf32>
    %27 = arith.addf %22, %26 : vector<8x1xf32>
    %c0_16 = arith.constant 0 : index
    %c0_17 = arith.constant 0 : index
    %28 = vector.load %arg10[%c0_16, %c0_17] : memref<8x1xf32, #tpu.memory_space<vmem>>, vector<8x1xf32>
    tpu.vector_store %arg10[%c0_16, %c0_17], %27 {strides = array<i32>} : memref<8x1xf32, #tpu.memory_space<vmem>>, vector<8x1xf32>,
    %c0_18 = arith.constant 0 : index
    %c0_19 = arith.constant 0 : index
    %29 = vector.load %arg6[%c0_18, %c0_19] : memref<8x1xf32, #tpu.memory_space<vmem>>, vector<8x1xf32>
    tpu.vector_store %arg6[%c0_18, %c0_19], %9 {strides = array<i32>} : memref<8x1xf32, #tpu.memory_space<vmem>>, vector<8x1xf32>,
    %c0_20 = arith.constant 0 : index
    %c0_21 = arith.constant 0 : index
    %30 = vector.load %arg8[%c0_20, %c0_21] : memref<8x1xf32, #tpu.memory_space<vmem>>, vector<8x1xf32>
    %cst_22 = arith.constant dense<0xFF800000> : vector<8xf32>
    %31 = vector.multi_reduction <maximumf>, %3, %cst_22 [1] : vector<8x32xf32> to vector<8xf32>
    %32 = vector.shape_cast %31 : vector<8xf32> to vector<8x1xf32>
    %33 = arith.maximumf %30, %32 : vector<8x1xf32>
    %34 = arith.subf %30, %33 : vector<8x1xf32>
    %35 = math.exp %34 : vector<8x1xf32>
    %c0_23 = arith.constant 0 : index
    %c0_24 = arith.constant 0 : index
    %36 = vector.load %arg9[%c0_23, %c0_24] : memref<8x1xf32, #tpu.memory_space<vmem>>, vector<8x1xf32>
    %37 = arith.mulf %35, %36 : vector<8x1xf32>
    %38 = vector.broadcast %33 : vector<8x1xf32> to vector<8x32xf32>
    %39 = arith.subf %3, %38 : vector<8x32xf32>
    %40 = math.exp %39 : vector<8x32xf32>
    %cst_25 = arith.constant dense<0.000000e+00> : vector<8xf32>
    %41 = vector.multi_reduction <add>, %40, %cst_25 [1] : vector<8x32xf32> to vector<8xf32>
    %42 = vector.shape_cast %41 : vector<8xf32> to vector<8x1xf32>
    %43 = arith.addf %37, %42 : vector<8x1xf32>
    %c0_26 = arith.constant 0 : index
    %c0_27 = arith.constant 0 : index
    %44 = vector.load %arg9[%c0_26, %c0_27] : memref<8x1xf32, #tpu.memory_space<vmem>>, vector<8x1xf32>
    tpu.vector_store %arg9[%c0_26, %c0_27], %43 {strides = array<i32>} : memref<8x1xf32, #tpu.memory_space<vmem>>, vector<8x1xf32>,
    %c0_28 = arith.constant 0 : index
    %c0_29 = arith.constant 0 : index
    %45 = vector.load %arg8[%c0_28, %c0_29] : memref<8x1xf32, #tpu.memory_space<vmem>>, vector<8x1xf32>
    tpu.vector_store %arg8[%c0_28, %c0_29], %33 {strides = array<i32>} : memref<8x1xf32, #tpu.memory_space<vmem>>, vector<8x1xf32>,
    %46 = tpu.iota {dimensions = array<i32: 1>} : vector<8x32xi32>
    %c32_i32 = arith.constant 32 : i32
    %47 = arith.muli %arg1, %c32_i32 : i32
    %48 = vector.broadcast %47 : i32 to vector<8x32xi32>
    %49 = arith.addi %46, %48 : vector<8x32xi32>
    %c0_30 = arith.constant 0 : index
    %c0_31 = arith.constant 0 : index
    %50 = vector.load %arg11[%c0_30, %c0_31] : memref<8x1xf32, #tpu.memory_space<vmem>>, vector<8x1xf32>
    %51 = vector.broadcast %5 : vector<8x1xi32> to vector<8x32xi32>
    %52 = arith.cmpi eq, %49, %51 : vector<8x32xi32>
    %cst_32 = arith.constant 0.000000e+00 : f32
    %53 = vector.broadcast %cst_32 : f32 to vector<8x32xf32>
    %54 = arith.select %52, %3, %53 : vector<8x32xi1>, vector<8x32xf32>
    %cst_33 = arith.constant dense<0.000000e+00> : vector<8xf32>
    %55 = vector.multi_reduction <add>, %54, %cst_33 [1] : vector<8x32xf32> to vector<8xf32>
    %56 = vector.shape_cast %55 : vector<8xf32> to vector<8x1xf32>
    %57 = arith.addf %50, %56 : vector<8x1xf32>
    %c0_34 = arith.constant 0 : index
    %c0_35 = arith.constant 0 : index
    %58 = vector.load %arg11[%c0_34, %c0_35] : memref<8x1xf32, #tpu.memory_space<vmem>>, vector<8x1xf32>
    tpu.vector_store %arg11[%c0_34, %c0_35], %57 {strides = array<i32>} : memref<8x1xf32, #tpu.memory_space<vmem>>, vector<8x1xf32>,
    %c0_i32_36 = arith.constant 0 : i32
    %59 = arith.cmpi eq, %arg1, %c0_i32_36 : i32
    %60 = arith.extui %59 : i1 to i32
    %c0_i32_37 = arith.constant 0 : i32
    %61 = arith.cmpi ne, %60, %c0_i32_37 : i32
    scf.if %61 {
      %c0_38 = arith.constant 0 : index
      %c0_39 = arith.constant 0 : index
      %62 = vector.load %arg6[%c0_38, %c0_39] : memref<8x1xf32, #tpu.memory_space<vmem>>, vector<8x1xf32>
      %c0_40 = arith.constant 0 : index
      %c0_41 = arith.constant 0 : index
      %63 = vector.load %arg7[%c0_40, %c0_41] : memref<8x1xf32, #tpu.memory_space<vmem>>, vector<8x1xf32>
      %64 = math.log %63 : vector<8x1xf32>
      %65 = arith.addf %62, %64 : vector<8x1xf32>
      %c0_42 = arith.constant 0 : index
      %c0_43 = arith.constant 0 : index
      %66 = vector.load %arg8[%c0_42, %c0_43] : memref<8x1xf32, #tpu.memory_space<vmem>>, vector<8x1xf32>
      %c0_44 = arith.constant 0 : index
      %c0_45 = arith.constant 0 : index
      %67 = vector.load %arg9[%c0_44, %c0_45] : memref<8x1xf32, #tpu.memory_space<vmem>>, vector<8x1xf32>
      %68 = math.log %67 : vector<8x1xf32>
      %69 = arith.addf %66, %68 : vector<8x1xf32>
      %c0_46 = arith.constant 0 : index
      %c0_47 = arith.constant 0 : index
      %70 = vector.load %arg10[%c0_46, %c0_47] : memref<8x1xf32, #tpu.memory_space<vmem>>, vector<8x1xf32>
      %cst_48 = arith.constant 1.000000e+00 : f32
      %71 = vector.broadcast %cst_48 : f32 to vector<8x1xf32>
      %72 = arith.mulf %70, %71 : vector<8x1xf32>
      %c0_49 = arith.constant 0 : index
      %c0_50 = arith.constant 0 : index
      %73 = vector.load %arg7[%c0_49, %c0_50] : memref<8x1xf32, #tpu.memory_space<vmem>>, vector<8x1xf32>
      %74 = arith.divf %72, %73 : vector<8x1xf32>
      %75 = arith.subf %74, %65 : vector<8x1xf32>
      %76 = arith.addf %75, %69 : vector<8x1xf32>
      %c0_51 = arith.constant 0 : index
      %c0_52 = arith.constant 0 : index
      %77 = vector.load %arg11[%c0_51, %c0_52] : memref<8x1xf32, #tpu.memory_space<vmem>>, vector<8x1xf32>
      %78 = arith.subf %69, %77 : vector<8x1xf32>
      %cst_53 = arith.constant 5.000000e-01 : f32
      %79 = vector.broadcast %cst_53 : f32 to vector<8x1xf32>
      %80 = arith.mulf %79, %76 : vector<8x1xf32>
      %cst_54 = arith.constant 5.000000e-01 : f32
      %81 = vector.broadcast %cst_54 : f32 to vector<8x1xf32>
      %82 = arith.mulf %81, %78 : vector<8x1xf32>
      %83 = arith.addf %80, %82 : vector<8x1xf32>
      %c0_55 = arith.constant 0 : index
      %c0_56 = arith.constant 0 : index
      %84 = vector.load %arg5[%c0_55, %c0_56] : memref<8x1xf32, #tpu.memory_space<vmem>>, vector<8x1xf32>
      tpu.vector_store %arg5[%c0_55, %c0_56], %83 {strides = array<i32>} : memref<8x1xf32, #tpu.memory_space<vmem>>, vector<8x1xf32>,
    } else {
    }
    return
  }
  func.func @transform_0(%arg0: i32, %arg1: i32) -> (i32, i32) {
    %c0_i32 = arith.constant 0 : i32
    return %arg0, %arg1 : i32, i32
  }
  func.func @transform_1(%arg0: i32, %arg1: i32) -> (i32, i32) {
    %c0_i32 = arith.constant 0 : i32
    return %arg0, %arg1 : i32, i32
  }
  func.func @transform_2(%arg0: i32, %arg1: i32) -> (i32, i32) {
    %c0_i32 = arith.constant 0 : i32
    %c0_i32_0 = arith.constant 0 : i32
    return %arg0, %c0_i32 : i32, i32
  }
  func.func @transform_3(%arg0: i32, %arg1: i32) -> (i32, i32) {
    %c0_i32 = arith.constant 0 : i32
    %c0_i32_0 = arith.constant 0 : i32
    return %arg0, %c0_i32 : i32, i32
  }
}

</mosaic_0001>

<bundles_post_ra>
// kernel: tpu_custom_call.1
= control target key start
LH: loop header
LB: loop body
LE: loop exit
PB: predicated region body
PF: predicated region fallthrough
CT: control target
= control target key end

     0   :  { %8 = vsyncpa [#allocation9], 0  ;;  %s186_s12 = smov [#allocation8]   ;;  %s241_s0 = inlined_call_operand.vmem [shape: f32[8,32], index: 0, kind: input, shape index: {}]   ;;  %s242_s1 = inlined_call_operand.hbm [shape: f32[8,32], index: 1, kind: input, shape index: {}]   ;;  %s243_s2 = inlined_call_operand.vmem [shape: s32[8,1], index: 2, kind: input, shape index: {}]   ;;  %s244_s3 = inlined_call_operand.vmem [shape: f32[8,1], index: 3, kind: output, shape index: {}]  }
   0x1   :  { %s17_s13 = sshll.u32 %s186_s12, 4  ;;  %s18_s13 = int_to_ptr.vmem [resolvable:$true] %s17_s13 }
   0x2   :  { %s172_s14 = scalar_lea.vmem %s18_s13, 128  ;;  %p177_p1 = scmp.lt.s32.totalorder %s18_s13, %s18_s13 }
   0x3   :  { %p173_p0 = scmp.ne.s32.totalorder %s18_s13, %s172_s14  ;;  %p178_p2 = scmp.lt.s32.totalorder %s172_s14, %s172_s14 }
   0x5   :  { %p179_p3 = por %p178_p2, %p177_p1 }
   0x7   :  { %p180_p4 = pnand %p179_p3, %p173_p0 }
   0x9   :  { %183 = shalt.err (!%p180_p4)
}
   0xa   :  { %20 = dma.hbm_to_vmem [thread:$0]  %s242_s1, 128, %s18_s13, [#allocation9]  }
   0xb   :  { %184 = dma.done.wait [#allocation9], 128  }
   0xc   :  { %185 = vsyncadd [#allocation9], 4294967168  ;;  %vm30_vm0 = vcmask 7168   ;;  %v187_v0 = vmov -inf   ;;  %vm41_vm1 = vcmask 261120   ;;  %v38_v1 = vld [vmem:[#allocation8] sm:$0xff]  ;;  %v99_v16 = vlaneseq }
   0xd   :  { %31 = vst.msk [vmem:[#allocation2] sm:$0xff] %vm30_vm0, %v187_v0  ;;  %33 = vst.msk [vmem:[#allocation4] sm:$0xff] %vm30_vm0, %v187_v0  ;;  %v37_v2 = vld [vmem:[%s241_s0] sm:$0xff]  ;;  %v42_v3 = vsel %vm41_vm1, %v38_v1, -inf  ;;  %v188_v5 = vmov 0   ;;  %v189_v6 = vmov 0.0  }
   0xe   :  { %43 = vmax.xlane.f32.xlu0 %v42_v3  ;;  %v76_v4 = vsel %vm41_vm1, %v37_v2, -inf  ;;  %148 = vset.pattern.permute.xlu1 %v188_v5  ;;  %32 = vst.msk [vmem:[#allocation3] sm:$0xff] %vm30_vm0, %v189_v6  ;;  %34 = vst.msk [vmem:[#allocation5] sm:$0xff] %vm30_vm0, %v189_v6  ;;  %v39_v7 = vld [vmem:[%s243_s2] sm:$0xff]  ;;  %v100_v18 = vand.u32 127, %v99_v16  ;;  %v67_v28 = vsub.f32 %v38_v1, %v37_v2 }
   0xf   :  { %149 = vset.pattern.permute.xlu0 %v188_v5  ;;  %35 = vst.msk [vmem:[#allocation6] sm:$0xff] %vm30_vm0, %v189_v6  ;;  %36 = vst.msk [vmem:[#allocation7] sm:$0xff] %vm30_vm0, %v189_v6 }
  0x12   :  { %77 = vmax.xlane.f32.xlu0 %v76_v4 }
  0x14   :  { %v40_v8 = vld [vmem:[#allocation2] sm:$0xff]  ;;  %v75_v11 = vld [vmem:[#allocation4] sm:$0xff] }
  0x15   :  { %v57_v40 = vld [vmem:[#allocation3] sm:$0xff]  ;;  %v83_v44 = vld [vmem:[#allocation5] sm:$0xff] }
  0x16   :  { %v104_v35 = vld [vmem:[#allocation7] sm:$0xff]  ;;  %v65_v48 = vld [vmem:[#allocation6] sm:$0xff] }
  0x28   :  { %106 = vperm.xlu0 %149, %v39_v7  }
  0x97   :  { %v44_v9 = vpop.xlane.xlu0 %43 }
  0x98   :  { %v45_v10 = vmax.f32 %v40_v8, %v44_v9 }
  0x9a   :  { %v46_v12 = vsub.f32 %v40_v8, %v45_v10  ;;  %74 = vst.msk [vmem:[#allocation2] sm:$0xff] %vm30_vm0, %v45_v10  ;;  %51 = vperm.xlu1 %148, %v45_v10  }
  0x9b   :  { %v78_v13 = vpop.xlane.xlu0 %77 }
  0x9c   :  { %v79_v14 = vmax.f32 %v75_v11, %v78_v13  ;;  %v47_v37 = vmul.f32 1.442695, %v46_v12 }
  0x9e   :  { %v80_v15 = vsub.f32 %v75_v11, %v79_v14  ;;  %98 = vst.msk [vmem:[#allocation4] sm:$0xff] %vm30_vm0, %v79_v14  ;;  %87 = vperm.xlu1 %148, %v79_v14  }
  0xa0   :  { %v81_v38 = vmul.f32 1.442695, %v80_v15 }
  0xa1   :  { %v118_v58 = vld [vmem:[#allocation2] sm:$0xff] }
  0xa3   :  { %v107_v17 = vpop.permute.xlu0 %106 }
  0xa4   :  { %vm108_vm2 = vcmp.eq.s32.totalorder %v100_v18, %v107_v17 }
  0xa5   :  { %v109_v19 = vsel %vm108_vm2, %v37_v2, 0.0  ;;  %v123_v0 = vld [vmem:[#allocation4] sm:$0xff] }
  0xa6   :  { %v110_v20 = vsel %vm41_vm1, %v109_v19, 0.0 }
  0xa7   :  { %111 = vadd.xlane.f32.xlu0 %v110_v20 }
 0x115   :  { %v52_v21 = vpop.permute.xlu1 %51 }
 0x116   :  { %v54_v22 = vsub.f32 %v38_v1, %v52_v21 }
 0x118   :  { %v55_v23 = vmul.f32 1.442695, %v54_v22 }
 0x119   :  { %v88_v24 = vpop.permute.xlu1 %87 }
 0x11a   :  { %150 = vpow2.f32 %v55_v23  ;;  %v90_v25 = vsub.f32 %v37_v2, %v88_v24 }
 0x11c   :  { %v91_v26 = vmul.f32 1.442695, %v90_v25 }
 0x11e   :  { %152 = vpow2.f32 %v91_v26 }
 0x11f   :  { %154 = vpow2.f32 %v47_v37 }
 0x120   :  { %156 = vpow2.f32 %v81_v38 }
 0x127   :  { %v151_v27 = vpop.eup %150 }
 0x128   :  { %v59_v29 = vsel %vm41_vm1, %v151_v27, 0.0  ;;  %v68_v32 = vmul.f32 %v151_v27, %v67_v28 }
 0x129   :  { %60 = vadd.xlane.f32.xlu1 %v59_v29 }
 0x12a   :  { %v69_v33 = vsel %vm41_vm1, %v68_v32, 0.0 }
 0x12b   :  { %v153_v30 = vpop.eup %152 }
 0x12c   :  { %v93_v31 = vsel %vm41_vm1, %v153_v30, 0.0  ;;  %v155_v39 = vpop.eup %154 }
 0x12d   :  { %94 = vadd.xlane.f32.xlu1 %v93_v31  ;;  %v58_v41 = vmul.f32 %v155_v39, %v57_v40  ;;  %v157_v42 = vpop.eup %156  ;;  %v66_v50 = vmul.f32 %v155_v39, %v65_v48 }
 0x12e   :  { %v84_v46 = vmul.f32 %v157_v42, %v83_v44 }
 0x130   :  { %v112_v34 = vpop.xlane.xlu0 %111 }
 0x131   :  { %70 = vadd.xlane.f32.xlu1 %v69_v33  ;;  %v113_v36 = vadd.f32 %v112_v34, %v104_v35 }
 0x133   :  { %114 = vst.msk [vmem:[#allocation7] sm:$0xff] %vm30_vm0, %v113_v36 }
 0x13a   :  { %v133_v1 = vld [vmem:[#allocation7] sm:$0xff] }
 0x1b2   :  { %v61_v43 = vpop.xlane.xlu1 %60 }
 0x1b3   :  { %v62_v45 = vadd.f32 %v61_v43, %v58_v41 }
 0x1b5   :  { %64 = vst.msk [vmem:[#allocation3] sm:$0xff] %vm30_vm0, %v62_v45 }
 0x1b6   :  { %v95_v47 = vpop.xlane.xlu1 %94 }
 0x1b7   :  { %v96_v49 = vadd.f32 %v95_v47, %v84_v46 }
 0x1b9   :  { %97 = vst.msk [vmem:[#allocation5] sm:$0xff] %vm30_vm0, %v96_v49 }
 0x1ba   :  { %v71_v51 = vpop.xlane.xlu1 %70 }
 0x1bb   :  { %v72_v52 = vadd.f32 %v71_v51, %v66_v50 }
 0x1bc   :  { %v119_v53 = vld [vmem:[#allocation3] sm:$0xff] }
 0x1bd   :  { %158 = vlog2.f32 %v119_v53  ;;  %73 = vst.msk [vmem:[#allocation6] sm:$0xff] %vm30_vm0, %v72_v52 }
 0x1be   :  { %160 = vrcp.f32 %v119_v53 }
 0x1c0   :  { %v124_v54 = vld [vmem:[#allocation5] sm:$0xff] }
 0x1c1   :  { %162 = vlog2.f32 %v124_v54 }
 0x1c4   :  { %v128_v61 = vld [vmem:[#allocation6] sm:$0xff] }
 0x1ca   :  { %v159_v55 = vpop.eup %158 }
 0x1cb   :  { %v121_v56 = vmul.f32 0.6931472, %v159_v55  ;;  %v161_v57 = vpop.eup %160 }
 0x1cc   :  { %v130_v62 = vmul.f32 %v161_v57, %v128_v61 }
 0x1cd   :  { %v122_v59 = vadd.f32 %v121_v56, %v118_v58 }
 0x1ce   :  { %v163_v60 = vpop.eup %162 }
 0x1cf   :  { %v126_v63 = vmul.f32 0.6931472, %v163_v60  ;;  %v131_v2 = vsub.f32 %v130_v62, %v122_v59 }
 0x1d1   :  { %v127_v3 = vadd.f32 %v126_v63, %v123_v0 }
 0x1d3   :  { %v132_v4 = vadd.f32 %v131_v2, %v127_v3  ;;  %v134_v5 = vsub.f32 %v127_v3, %v133_v1 }
 0x1d5   :  { %v135_v6 = vmul.f32 0.5, %v132_v4  ;;  %v136_v7 = vmul.f32 0.5, %v134_v5 }
 0x1d7   :  { %v137_v8 = vadd.f32 %v136_v7, %v135_v6 }
 0x1d9   :  { %138 = vst.msk [vmem:[%s244_s3] sm:$0xff] %vm30_vm0, %v137_v8 }
 0x1da   :  { %143 = vsyncpa [#allocation9], 1 }

</bundles_post_ra>
